<compile_context>
chip_gen: v6e
topology: v6e:2x2x1
jax: 0.10.0
libtpu: 0.0.40
codegen_flags: <defaults>
</compile_context>

<pallas_src>
import functools

import jax
import jax.numpy as jnp
from jax import lax
from jax.experimental import pallas as pl
from jax.experimental.pallas import tpu as pltpu

_LANES = 128
_MAX_BLOCK_ROWS = 2048          # 2048 x 128 f32 = 1 MiB per input block
_ALIGN = 8 * _LANES             # one f32 (8,128) tile = 1024 elements


def _sq_diff_kernel(t_ref, r_ref, o_ref, acc_ref, *,
                    block_rows, total_rows, steps_per_chunk, grid_blocks):
    """Accumulates sum((t - r)^2) for one chunk of blocks.

    Grid = (num_chunks, steps_per_chunk); inner axis is the sequential
    reduction ('arbitrary'), outer axis is 'parallel' (megacore-shardable).
    Writes one (8, 128) partial-sum tile per chunk.
    """
    c = pl.program_id(0)
    i = pl.program_id(1)

    @pl.when(i == 0)
    def _init():
        acc_ref[...] = jnp.zeros_like(acc_ref)

    # Logical (unclamped) block index for this grid step.
    gb = c * steps_per_chunk + i
    num_full_blocks = total_rows // block_rows  # static

    def _accumulate(mask_rows):
        d = t_ref[...].astype(jnp.float32) - r_ref[...].astype(jnp.float32)
        if mask_rows:
            # Mask rows past the true end of the array (contents undefined).
            row0 = gb * block_rows
            local = lax.broadcasted_iota(jnp.int32, d.shape, 0)
            d = jnp.where(row0 + local < total_rows, d, 0.0)
        acc_ref[...] += d * d

    if grid_blocks > num_full_blocks:
        # Some blocks are partial / fully out of range: mask only those.
        @pl.when(gb < num_full_blocks)
        def _full():
            _accumulate(False)

        @pl.when(gb >= num_full_blocks)
        def _partial():
            _accumulate(True)
    else:
        _accumulate(False)

    @pl.when(i == pl.num_programs(1) - 1)
    def _finalize():
        acc = acc_ref[...]                                   # (block_rows, 128)
        # Collapse sublane groups onto one (8, 128) tile (pure VPU adds).
        o_ref[...] = jnp.sum(
            acc.reshape(block_rows // 8, 8, _LANES), axis=0)


def noise_scale(target: jax.Array, reconstructed: jax.Array) -> jax.Array:
    """RMSE = sqrt(mean((target - reconstructed)**2)); matches
    torch.nn.MSELoss()(target, reconstructed) ** 0.5 (default 'mean')."""
    assert target.shape == reconstructed.shape, "shapes must match"
    n = target.size

    t_flat = target.reshape(-1)
    r_flat = reconstructed.reshape(-1)

    n_main = (n // _ALIGN) * _ALIGN            # bulk, multiple of 8*128
    sq_sum = jnp.float32(0.0)

    # Unaligned tail (< 1024 elements): plain jnp, negligible cost, no copies
    # of the bulk data are ever materialized.
    if n_main < n:
        dt = (t_flat[n_main:].astype(jnp.float32)
              - r_flat[n_main:].astype(jnp.float32))
        sq_sum = sq_sum + jnp.sum(dt * dt)

    if n_main > 0:
        rows = n_main // _LANES                # multiple of 8
        t2d = t_flat[:n_main].reshape(rows, _LANES)
        r2d = r_flat[:n_main].reshape(rows, _LANES)

        block_rows = min(_MAX_BLOCK_ROWS, rows)
        num_blocks = pl.cdiv(rows, block_rows)
        num_chunks = 2 if num_blocks >= 2 else 1   # 2 TCs on v7x
        steps = pl.cdiv(num_blocks, num_chunks)

        kernel = functools.partial(
            _sq_diff_kernel,
            block_rows=block_rows,
            total_rows=rows,
            steps_per_chunk=steps,
            grid_blocks=num_chunks * steps,
        )

        def in_map(c, i):
            # Clamp so fully out-of-range blocks (odd num_blocks with 2
            # chunks) re-read a valid block; their contribution is masked.
            return (jnp.minimum(c * steps + i, num_blocks - 1), 0)

        itemsize = target.dtype.itemsize
        partials = pl.pallas_call(
            kernel,
            out_shape=jax.ShapeDtypeStruct((num_chunks * 8, _LANES),
                                           jnp.float32),
            grid_spec=pltpu.PrefetchScalarGridSpec(
                num_scalar_prefetch=0,
                grid=(num_chunks, steps),
                in_specs=[
                    pl.BlockSpec((block_rows, _LANES), in_map),
                    pl.BlockSpec((block_rows, _LANES), in_map),
                ],
                out_specs=pl.BlockSpec((8, _LANES), lambda c, i: (c, 0)),
                scratch_shapes=[pltpu.VMEM((block_rows, _LANES), jnp.float32)],
            ),
            compiler_params=pltpu.CompilerParams(
                dimension_semantics=("parallel", "arbitrary")),
            cost_estimate=pl.CostEstimate(
                flops=3 * n_main,
                transcendentals=0,
                bytes_accessed=2 * n_main * itemsize
                + num_chunks * 8 * _LANES * 4),
        )(t2d, r2d)

        sq_sum = sq_sum + jnp.sum(partials)

    return jnp.sqrt(sq_sum / jnp.float32(n))


if __name__ == "__main__":
    key = jax.random.PRNGKey(0)
    k1, k2 = jax.random.split(key)
    # Small shapes consistent with an image-reconstruction loss: NCHW.
    target = jax.random.normal(k1, (2, 4, 16, 16), dtype=jnp.float32)
    reconstructed = jax.random.normal(k2, (2, 4, 16, 16), dtype=jnp.float32)

    result = noise_scale(target, reconstructed)
    jax.block_until_ready(result)

    # Reference check (pure JAX) — same semantics as torch.nn.MSELoss()**0.5
    ref = jnp.sqrt(jnp.mean((target - reconstructed) ** 2))
    assert jnp.allclose(result, ref, rtol=1e-5, atol=1e-6), (result, ref)

    print("KERNEL_OK")
</pallas_src>

<mosaic_0001>
module attributes {stable_mosaic.version = 11 : i64} {
  func.func @_sq_diff_kernel(%arg0: i32, %arg1: i32, %arg2: memref<16x128xf32, #tpu.memory_space<vmem>>, %arg3: memref<16x128xf32, #tpu.memory_space<vmem>>, %arg4: memref<8x128xf32, #tpu.memory_space<vmem>>, %arg5: memref<16x128xf32, #tpu.memory_space<vmem>>) attributes {dimension_semantics = [#tpu.dimension_semantics<parallel>, #tpu.dimension_semantics<arbitrary>], iteration_bounds = array<i64: 1, 1>, scalar_prefetch = 0 : i64, scratch_operands = 1 : i64, tpu.core_type = #tpu.core_type<tc>, window_params = [{transform_indices = @transform_0, window_bounds = array<i64: 16, 128>}, {transform_indices = @transform_1, window_bounds = array<i64: 16, 128>}, {transform_indices = @transform_2, window_bounds = array<i64: 8, 128>}]} {
    %c0_i32 = arith.constant 0 : i32
    %0 = arith.cmpi eq, %arg1, %c0_i32 : i32
    %1 = arith.extui %0 : i1 to i32
    %c0_i32_0 = arith.constant 0 : i32
    %2 = arith.cmpi ne, %1, %c0_i32_0 : i32
    scf.if %2 {
      %cst = arith.constant 0.000000e+00 : f32
      %13 = vector.broadcast %cst : f32 to vector<16x128xf32>
      %c0_10 = arith.constant 0 : index
      %c0_11 = arith.constant 0 : index
      %14 = vector.load %arg5[%c0_10, %c0_11] : memref<16x128xf32, #tpu.memory_space<vmem>>, vector<16x128xf32>
      tpu.vector_store %arg5[%c0_10, %c0_11], %13 {strides = array<i32>} : memref<16x128xf32, #tpu.memory_space<vmem>>, vector<16x128xf32>,
    } else {
    }
    %c0 = arith.constant 0 : index
    %c0_1 = arith.constant 0 : index
    %3 = vector.load %arg2[%c0, %c0_1] : memref<16x128xf32, #tpu.memory_space<vmem>>, vector<16x128xf32>
    %c0_2 = arith.constant 0 : index
    %c0_3 = arith.constant 0 : index
    %4 = vector.load %arg3[%c0_2, %c0_3] : memref<16x128xf32, #tpu.memory_space<vmem>>, vector<16x128xf32>
    %5 = arith.subf %3, %4 : vector<16x128xf32>
    %c0_4 = arith.constant 0 : index
    %c0_5 = arith.constant 0 : index
    %6 = vector.load %arg5[%c0_4, %c0_5] : memref<16x128xf32, #tpu.memory_space<vmem>>, vector<16x128xf32>
    %7 = arith.mulf %5, %5 : vector<16x128xf32>
    %8 = arith.addf %6, %7 : vector<16x128xf32>
    %c0_6 = arith.constant 0 : index
    %c0_7 = arith.constant 0 : index
    %9 = vector.load %arg5[%c0_6, %c0_7] : memref<16x128xf32, #tpu.memory_space<vmem>>, vector<16x128xf32>
    tpu.vector_store %arg5[%c0_6, %c0_7], %8 {strides = array<i32>} : memref<16x128xf32, #tpu.memory_space<vmem>>, vector<16x128xf32>,
    %c0_i32_8 = arith.constant 0 : i32
    %10 = arith.cmpi eq, %arg1, %c0_i32_8 : i32
    %11 = arith.extui %10 : i1 to i32
    %c0_i32_9 = arith.constant 0 : i32
    %12 = arith.cmpi ne, %11, %c0_i32_9 : i32
    scf.if %12 {
      %c0_10 = arith.constant 0 : index
      %c0_11 = arith.constant 0 : index
      %13 = vector.load %arg5[%c0_10, %c0_11] : memref<16x128xf32, #tpu.memory_space<vmem>>, vector<16x128xf32>
      %14 = vector.shape_cast %13 : vector<16x128xf32> to vector<2x8x128xf32>
      %cst = arith.constant dense<0.000000e+00> : vector<8x128xf32>
      %15 = vector.multi_reduction <add>, %14, %cst [0] : vector<2x8x128xf32> to vector<8x128xf32>
      %c0_12 = arith.constant 0 : index
      %c0_13 = arith.constant 0 : index
      %16 = vector.load %arg4[%c0_12, %c0_13] : memref<8x128xf32, #tpu.memory_space<vmem>>, vector<8x128xf32>
      tpu.vector_store %arg4[%c0_12, %c0_13], %15 {strides = array<i32>} : memref<8x128xf32, #tpu.memory_space<vmem>>, vector<8x128xf32>,
    } else {
    }
    return
  }
  func.func @transform_0(%arg0: i32, %arg1: i32) -> (i32, i32) {
    %c1_i32 = arith.constant 1 : i32
    %0 = arith.muli %arg0, %c1_i32 : i32
    %1 = arith.addi %0, %arg1 : i32
    %c0_i32 = arith.constant 0 : i32
    %2 = arith.minsi %1, %c0_i32 : i32
    %c0_i32_0 = arith.constant 0 : i32
    %c0_i32_1 = arith.constant 0 : i32
    return %2, %c0_i32_0 : i32, i32
  }
  func.func @transform_1(%arg0: i32, %arg1: i32) -> (i32, i32) {
    %c1_i32 = arith.constant 1 : i32
    %0 = arith.muli %arg0, %c1_i32 : i32
    %1 = arith.addi %0, %arg1 : i32
    %c0_i32 = arith.constant 0 : i32
    %2 = arith.minsi %1, %c0_i32 : i32
    %c0_i32_0 = arith.constant 0 : i32
    %c0_i32_1 = arith.constant 0 : i32
    return %2, %c0_i32_0 : i32, i32
  }
  func.func @transform_2(%arg0: i32, %arg1: i32) -> (i32, i32) {
    %c0_i32 = arith.constant 0 : i32
    %c0_i32_0 = arith.constant 0 : i32
    return %arg0, %c0_i32 : i32, i32
  }
}

</mosaic_0001>

<bundles_post_ra>
// kernel: tpu_custom_call.1
= control target key start
LH: loop header
LB: loop body
LE: loop exit
PB: predicated region body
PF: predicated region fallthrough
CT: control target
= control target key end

     0   :  { %7 = vsyncpa [#allocation4], 0  ;;  %s207_s0 = inlined_call_operand.hbm [shape: f32[16,128], index: 0, kind: input, shape index: {}]   ;;  %s208_s1 = inlined_call_operand.hbm [shape: f32[16,128], index: 1, kind: input, shape index: {}]   ;;  %s209_s2 = inlined_call_operand.hbm [shape: f32[8,128], index: 2, kind: output, shape index: {}]  }
   0x1   :  { %8 = vsyncpa [#allocation7], 0 }
   0x2   :  { %9 = vsyncpa [#allocation5], 0  ;;  %s178_s9 = smov [#allocation3]  }
   0x3   :  { %s21_s10 = sshll.u32 %s178_s9, 4  ;;  %s22_s10 = int_to_ptr.vmem [resolvable:$true] %s21_s10 }
   0x4   :  { %s120_s11 = scalar_lea.vmem %s22_s10, 256  ;;  %p125_p1 = scmp.lt.s32.totalorder %s22_s10, %s22_s10 }
   0x5   :  { %p121_p0 = scmp.ne.s32.totalorder %s22_s10, %s120_s11  ;;  %p126_p2 = scmp.lt.s32.totalorder %s120_s11, %s120_s11 }
   0x7   :  { %p127_p3 = por %p126_p2, %p125_p1 }
   0x9   :  { %p128_p4 = pnand %p127_p3, %p121_p0 }
   0xb   :  { %131 = shalt.err (!%p128_p4)
}
   0xc   :  { %s179_s12 = smov 128   ;;  %s180_s13 = smov 8  }
   0xd   :  { %27 = dma.hbm_to_vmem [thread:$0]  %s207_s0, 256, %s22_s10, [#allocation4], %s179_s12, %s179_s12, %s180_s13  }
   0xe   :  { %s181_s16 = smov [#allocation6]  }
   0xf   :  { %s39_s17 = sshll.u32 %s181_s16, 4  ;;  %s40_s17 = int_to_ptr.vmem [resolvable:$true] %s39_s17 }
  0x10   :  { %s140_s18 = scalar_lea.vmem %s40_s17, 256  ;;  %p145_p6 = scmp.lt.s32.totalorder %s40_s17, %s40_s17 }
  0x11   :  { %p141_p5 = scmp.ne.s32.totalorder %s40_s17, %s140_s18  ;;  %p146_p7 = scmp.lt.s32.totalorder %s140_s18, %s140_s18 }
  0x13   :  { %p147_p8 = por %p146_p7, %p145_p6 }
  0x15   :  { %p148_p9 = pnand %p147_p8, %p141_p5 }
  0x17   :  { %151 = shalt.err (!%p148_p9)
}
  0x18   :  { %45 = dma.hbm_to_vmem [thread:$0]  %s208_s1, 256, %s40_s17, [#allocation7], %s179_s12, %s179_s12, %s180_s13  }
  0x19   :  { %172 = dma.done.wait [#allocation4], 256  }
  0x1a   :  { %173 = vsyncadd [#allocation4], 4294967040 }
  0x1b   :  { %174 = dma.done.wait [#allocation7], 256  }
  0x1c   :  { %175 = vsyncadd [#allocation7], 4294967040  ;;  %v66_v0 = vld [vmem:[#allocation3] sm:$0xff]  ;;  %v67_v1 = vld [vmem:[#allocation3 + $0x8] sm:$0xff]  ;;  %s182_s0 = smov [#allocation8]  }
  0x1d   :  { %v68_v2 = vld [vmem:[#allocation6] sm:$0xff]  ;;  %v69_v3 = vld [vmem:[#allocation6 + $0x8] sm:$0xff]  ;;  %s93_s21 = sshll.u32 %s182_s0, 4  ;;  %s94_s21 = int_to_ptr.vmem [resolvable:$true] %s93_s21 }
  0x1e   :  { %v70_v4 = vsub.f32 %v66_v0, %v68_v2  ;;  %v71_v5 = vsub.f32 %v67_v1, %v69_v3  ;;  %s152_s22 = scalar_lea.vmem %s94_s21, 128  ;;  %p157_p11 = scmp.lt.s32.totalorder %s94_s21, %s94_s21 }
  0x1f   :  { %p153_p10 = scmp.ne.s32.totalorder %s94_s21, %s152_s22  ;;  %p158_p12 = scmp.lt.s32.totalorder %s152_s22, %s152_s22 }
  0x20   :  { %v74_v6 = vmul.f32 %v70_v4, %v70_v4  ;;  %v75_v7 = vmul.f32 %v71_v5, %v71_v5 }
  0x21   :  { %p159_p13 = por %p158_p12, %p157_p11 }
  0x22   :  { %v85_v8 = vadd.f32 %v75_v7, %v74_v6 }
  0x23   :  { %p160_p0 = pnand %p159_p13, %p153_p10 }
  0x24   :  { %86 = vst [vmem:[#allocation8] sm:$0xff] %v85_v8 }
  0x25   :  { %163 = shalt.err (!%p160_p0)
}
  0x26   :  { %96 = dma.vmem_to_hbm [thread:$0]  %s94_s21, 128, %s209_s2, [#allocation5]  }
  0x27   :  { %176 = dma.done.wait [#allocation5], 128  }
  0x28   :  { %177 = vsyncadd [#allocation5], 4294967168 }
  0x29   :  { %100 = vsyncpa [#allocation4], 1 }
  0x2a   :  { %101 = vsyncpa [#allocation7], 1 }
  0x2b   :  { %102 = vsyncpa [#allocation5], 1 }

</bundles_post_ra>
